<compile_context>
chip_gen: v5e
topology: v5e:2x2
jax: 0.10.0
libtpu: 0.0.40
codegen_flags: <defaults>
</compile_context>

<pallas_src>
import functools

import jax
import jax.numpy as jnp
from jax.experimental import pallas as pl
from jax.experimental.pallas import tpu as pltpu


def _round_up(x, m):
    return ((x + m - 1) // m) * m


def _pick_tile(C, HW, max_tile=65536, budget_bytes=10 * 1024 * 1024):
    """Pick a pixel-tile width (lane axis): big, but VMEM-safe for the given C."""
    # ~6 live f32 (C, tile) slabs (double-buffered input + 2-3 intermediates).
    t = budget_bytes // (24 * max(C, 1))
    t = max(128, min(max_tile, t))
    t = min(t, _round_up(HW, 128))
    return max(128, (t // 128) * 128)


def _pick_chunks(N, n_tiles, target_parallel=8):
    """Largest divisor of n_tiles so that N * n_chunks >= ~target_parallel."""
    want = max(1, -(-target_parallel // max(N, 1)))   # cdiv(target, N)
    want = min(want, n_tiles)
    for d in range(want, 0, -1):
        if n_tiles % d == 0:
            return d
    return 1


def _nfocal_kernel(logit_ref, tgt_ref, ce_acc_ref, fl_acc_ref, *,
                   gamma, ignore_index, hw, tile_hw, tiles_per_chunk, ragged):
    p = pl.program_id(2)

    # Accumulator init on the first pixel-tile of each (sample, chunk) pair
    # (outputs are resident across the innermost "arbitrary" grid axis).
    @pl.when(p == 0)
    def _():
        ce_acc_ref[...] = jnp.zeros_like(ce_acc_ref)
        fl_acc_ref[...] = jnp.zeros_like(fl_acc_ref)

    raw = logit_ref[...]                              # (C, T) native dtype
    tgt = tgt_ref[...].astype(jnp.int32)              # (1, T)
    C, T = raw.shape

    # Target-class gather on the raw-dtype logits (one nonzero per column, so
    # the sublane sum is exact even in bf16); only the (1, T) result is f32.
    # TODO(synk): PyTorch would fault on a non-ignored label >= C; here the
    # one-hot gather silently returns 0 for such labels.
    cls_ids = jax.lax.broadcasted_iota(jnp.int32, (C, T), 0)
    x_t = jnp.sum(jnp.where(cls_ids == tgt, raw, jnp.zeros([], raw.dtype)),
                  axis=0, keepdims=True).astype(jnp.float32)       # (1, T)

    # log-sum-exp over the class (sublane) axis; the f32 (C, T) slab dies
    # right after the exp.
    x = raw.astype(jnp.float32)
    m = jnp.max(x, axis=0, keepdims=True)                          # (1, T)
    s = jnp.sum(jnp.exp(x - m), axis=0, keepdims=True)             # (1, T)
    lse = jnp.log(s) + m                                           # (1, T)

    # Validity mask: not ignore_index (and in-bounds pixel for a ragged tail,
    # statically skipped when HW % tile_hw == 0).
    valid = tgt != ignore_index
    if ragged:
        col = (jax.lax.broadcasted_iota(jnp.int32, (1, T), 1)
               + (pl.program_id(1) * tiles_per_chunk + p) * tile_hw)
        valid = valid & (col < hw)

    # CrossEntropyLoss(reduction='none', ignore_index): 0 where ignored/padded
    # (true select, so garbage in padded lanes never reaches the accumulators).
    ce = jnp.where(valid, lse - x_t, 0.0)                          # (1, T)
    pt = jnp.exp(-ce)                                              # p(target)
    one_minus_pt = 1.0 - pt

    # (1 - pt)**gamma : pure VPU multiplies when gamma is an integer.
    if float(gamma) == int(gamma) and int(gamma) >= 0:
        gi = int(gamma)
        if gi == 0:
            w = jnp.ones_like(one_minus_pt)
        else:
            w = one_minus_pt
            for _ in range(gi - 1):
                w = w * one_minus_pt
    else:
        w = one_minus_pt ** gamma
    fl = w * ce

    # Lane-dense accumulation (plain VPU adds; no per-step scalar reduce).
    ce_acc_ref[...] += ce
    fl_acc_ref[...] += fl


def nfocal_loss(logit, target, *, gamma=2, loss_weight=1.0,
                ignore_index=255, tile_hw=None):
    """Forward of NFocalLoss. logit: (N, C, H, W), target: (N, H, W) int."""
    N, C, H, W = logit.shape
    HW = H * W
    if tile_hw is None:
        tile_hw = _pick_tile(C, HW)
    n_tiles = pl.cdiv(HW, tile_hw)
    ragged = (HW % tile_hw) != 0

    # Chunk the pixel axis so batch*chunks gives both v7x TensorCores work even
    # at small N; only when n_chunks divides n_tiles evenly (otherwise the
    # ragged tail stays in a single chunk).
    n_chunks = 1 if ragged else _pick_chunks(N, n_tiles)
    tiles_per_chunk = n_tiles // n_chunks

    # Free views — no transpose, no wrapper-side dtype casts (all upcasts
    # happen inside the kernel).
    x = logit.reshape(N, C, HW)
    t = target.reshape(N, 1, HW)

    kernel = functools.partial(
        _nfocal_kernel, gamma=gamma, ignore_index=ignore_index, hw=HW,
        tile_hw=tile_hw, tiles_per_chunk=tiles_per_chunk, ragged=ragged)

    acc_rows = N * n_chunks
    ce_part, fl_part = pl.pallas_call(
        kernel,
        out_shape=(jax.ShapeDtypeStruct((acc_rows, 1, tile_hw), jnp.float32),
                   jax.ShapeDtypeStruct((acc_rows, 1, tile_hw), jnp.float32)),
        grid_spec=pltpu.PrefetchScalarGridSpec(
            num_scalar_prefetch=0,
            grid=(N, n_chunks, tiles_per_chunk),
            in_specs=[
                pl.BlockSpec((None, C, tile_hw),
                             lambda n, c, p: (n, 0, c * tiles_per_chunk + p)),
                pl.BlockSpec((None, 1, tile_hw),
                             lambda n, c, p: (n, 0, c * tiles_per_chunk + p)),
            ],
            out_specs=(
                pl.BlockSpec((None, 1, tile_hw),
                             lambda n, c, p: (n * n_chunks + c, 0, 0)),
                pl.BlockSpec((None, 1, tile_hw),
                             lambda n, c, p: (n * n_chunks + c, 0, 0)),
            ),
        ),
        compiler_params=pltpu.CompilerParams(
            dimension_semantics=("parallel", "parallel", "arbitrary"),
            vmem_limit_bytes=32 * 1024 * 1024),
    )(x, t)

    # Tiny final reductions of the lane-dense partials (plain JAX).
    sum_ce = jnp.sum(ce_part)
    sum_fl = jnp.sum(fl_part)

    P = N * HW
    # z = ce.sum() / fl.sum()  (detached in PyTorch; forward value identical,
    # including NaN when fl.sum() == 0 — same hazard as the original module).
    z = sum_ce / sum_fl
    # loss = mean(z * (1-pt)^gamma * ce) over all N*H*W pixels = z * sum_fl / P.
    loss = z * sum_fl / P
    return loss_weight * loss


def _reference_nfocal(logit, target, *, gamma=2, loss_weight=1.0,
                      ignore_index=255):
    """Pure-JAX reference mirroring the PyTorch forward, for verification."""
    x = logit.astype(jnp.float32)
    logp = jax.nn.log_softmax(x, axis=1)                      # (N, C, H, W)
    tgt = target.astype(jnp.int32)
    valid = tgt != ignore_index
    tgt_safe = jnp.where(valid, tgt, 0)
    gathered = jnp.take_along_axis(logp, tgt_safe[:, None], axis=1)[:, 0]
    ce = jnp.where(valid, -gathered, 0.0)                     # (N, H, W)
    logpt = -ce
    pt = jnp.exp(logpt)
    fl = -((1.0 - pt) ** gamma) * logpt
    z = ce.sum() / fl.sum()
    loss = (z * (1.0 - pt) ** gamma * ce).mean()
    return loss_weight * loss


if __name__ == "__main__":
    key = jax.random.PRNGKey(0)
    k1, k2 = jax.random.split(key)

    N, C, H, W = 2, 4, 16, 16
    logit = jax.random.normal(k1, (N, C, H, W), dtype=jnp.float32)
    target = jax.random.randint(k2, (N, H, W), 0, C, dtype=jnp.int32)
    # Sprinkle in some ignore_index pixels to exercise masking.
    target = target.at[0, 0, :4].set(255)

    out = nfocal_loss(logit, target, gamma=2, loss_weight=1.0, ignore_index=255)
    out = jax.block_until_ready(out)

    ref = _reference_nfocal(logit, target, gamma=2, loss_weight=1.0,
                            ignore_index=255)
    assert jnp.allclose(out, ref, rtol=1e-5, atol=1e-6), (out, ref)

    print("KERNEL_OK")
</pallas_src>

<mosaic_0001>
module attributes {stable_mosaic.version = 11 : i64} {
  func.func @_nfocal_kernel(%arg0: i32, %arg1: i32, %arg2: i32, %arg3: memref<1x4x256xf32, #tpu.memory_space<vmem>>, %arg4: memref<1x1x256xi32, #tpu.memory_space<vmem>>, %arg5: memref<1x1x256xf32, #tpu.memory_space<vmem>>, %arg6: memref<1x1x256xf32, #tpu.memory_space<vmem>>) attributes {dimension_semantics = [#tpu.dimension_semantics<parallel>, #tpu.dimension_semantics<parallel>, #tpu.dimension_semantics<arbitrary>], iteration_bounds = array<i64: 2, 1, 1>, scalar_prefetch = 0 : i64, scratch_operands = 0 : i64, tpu.core_type = #tpu.core_type<tc>, window_params = [{transform_indices = @transform_0, window_bounds = array<i64: 1, 4, 256>}, {transform_indices = @transform_1, window_bounds = array<i64: 1, 1, 256>}, {transform_indices = @transform_2, window_bounds = array<i64: 1, 1, 256>}, {transform_indices = @transform_3, window_bounds = array<i64: 1, 1, 256>}]} {
    %c0_i32 = arith.constant 0 : i32
    %0 = arith.cmpi eq, %arg2, %c0_i32 : i32
    %1 = arith.extui %0 : i1 to i32
    %c0_i32_0 = arith.constant 0 : i32
    %2 = arith.cmpi ne, %1, %c0_i32_0 : i32
    scf.if %2 {
      %cst_24 = arith.constant 0.000000e+00 : f32
      %47 = vector.broadcast %cst_24 : f32 to vector<1x256xf32>
      %c0_25 = arith.constant 0 : index
      %c0_26 = arith.constant 0 : index
      %c0_27 = arith.constant 0 : index
      %48 = vector.load %arg5[%c0_25, %c0_26, %c0_27] : memref<1x1x256xf32, #tpu.memory_space<vmem>>, vector<1x1x256xf32>
      %49 = vector.shape_cast %48 : vector<1x1x256xf32> to vector<1x256xf32>
      %50 = vector.shape_cast %47 : vector<1x256xf32> to vector<1x1x256xf32>
      tpu.vector_store %arg5[%c0_25, %c0_26, %c0_27], %50 {strides = array<i32>} : memref<1x1x256xf32, #tpu.memory_space<vmem>>, vector<1x1x256xf32>,
      %cst_28 = arith.constant 0.000000e+00 : f32
      %51 = vector.broadcast %cst_28 : f32 to vector<1x256xf32>
      %c0_29 = arith.constant 0 : index
      %c0_30 = arith.constant 0 : index
      %c0_31 = arith.constant 0 : index
      %52 = vector.load %arg6[%c0_29, %c0_30, %c0_31] : memref<1x1x256xf32, #tpu.memory_space<vmem>>, vector<1x1x256xf32>
      %53 = vector.shape_cast %52 : vector<1x1x256xf32> to vector<1x256xf32>
      %54 = vector.shape_cast %51 : vector<1x256xf32> to vector<1x1x256xf32>
      tpu.vector_store %arg6[%c0_29, %c0_30, %c0_31], %54 {strides = array<i32>} : memref<1x1x256xf32, #tpu.memory_space<vmem>>, vector<1x1x256xf32>,
    } else {
    }
    %c0 = arith.constant 0 : index
    %c0_1 = arith.constant 0 : index
    %c0_2 = arith.constant 0 : index
    %3 = vector.load %arg3[%c0, %c0_1, %c0_2] : memref<1x4x256xf32, #tpu.memory_space<vmem>>, vector<1x4x256xf32>
    %4 = vector.shape_cast %3 : vector<1x4x256xf32> to vector<4x256xf32>
    %c0_3 = arith.constant 0 : index
    %c0_4 = arith.constant 0 : index
    %c0_5 = arith.constant 0 : index
    %5 = vector.load %arg4[%c0_3, %c0_4, %c0_5] : memref<1x1x256xi32, #tpu.memory_space<vmem>>, vector<1x1x256xi32>
    %6 = vector.shape_cast %5 : vector<1x1x256xi32> to vector<1x256xi32>
    %7 = tpu.iota {dimensions = array<i32: 0>} : vector<4x256xi32>
    %8 = vector.broadcast %6 : vector<1x256xi32> to vector<4x256xi32>
    %9 = arith.cmpi eq, %7, %8 : vector<4x256xi32>
    %cst = arith.constant 0.000000e+00 : f32
    %10 = vector.broadcast %cst : f32 to vector<4x256xf32>
    %11 = arith.select %9, %4, %10 : vector<4x256xi1>, vector<4x256xf32>
    %cst_6 = arith.constant dense<0.000000e+00> : vector<256xf32>
    %12 = vector.multi_reduction <add>, %11, %cst_6 [0] : vector<4x256xf32> to vector<256xf32>
    %13 = vector.shape_cast %12 : vector<256xf32> to vector<1x256xf32>
    %cst_7 = arith.constant dense<0xFF800000> : vector<256xf32>
    %14 = vector.multi_reduction <maximumf>, %4, %cst_7 [0] : vector<4x256xf32> to vector<256xf32>
    %15 = vector.shape_cast %14 : vector<256xf32> to vector<1x256xf32>
    %16 = vector.broadcast %15 : vector<1x256xf32> to vector<4x256xf32>
    %17 = arith.subf %4, %16 : vector<4x256xf32>
    %18 = math.exp %17 : vector<4x256xf32>
    %cst_8 = arith.constant dense<0.000000e+00> : vector<256xf32>
    %19 = vector.multi_reduction <add>, %18, %cst_8 [0] : vector<4x256xf32> to vector<256xf32>
    %20 = vector.shape_cast %19 : vector<256xf32> to vector<1x256xf32>
    %21 = math.log %20 : vector<1x256xf32>
    %22 = arith.addf %21, %15 : vector<1x256xf32>
    %c255_i32 = arith.constant 255 : i32
    %23 = vector.broadcast %c255_i32 : i32 to vector<1x256xi32>
    %24 = arith.cmpi ne, %6, %23 : vector<1x256xi32>
    %25 = arith.subf %22, %13 : vector<1x256xf32>
    %cst_9 = arith.constant 0.000000e+00 : f32
    %26 = vector.broadcast %cst_9 : f32 to vector<1x256xf32>
    %27 = arith.select %24, %25, %26 : vector<1x256xi1>, vector<1x256xf32>
    %cst_10 = arith.constant 0.000000e+00 : f32
    %28 = vector.broadcast %cst_10 : f32 to vector<1x256xf32>
    %29 = arith.subf %28, %27 : vector<1x256xf32>
    %30 = math.exp %29 : vector<1x256xf32>
    %cst_11 = arith.constant 1.000000e+00 : f32
    %31 = vector.broadcast %cst_11 : f32 to vector<1x256xf32>
    %32 = arith.subf %31, %30 : vector<1x256xf32>
    %33 = arith.mulf %32, %32 : vector<1x256xf32>
    %34 = arith.mulf %33, %27 : vector<1x256xf32>
    %c0_12 = arith.constant 0 : index
    %c0_13 = arith.constant 0 : index
    %c0_14 = arith.constant 0 : index
    %35 = vector.load %arg5[%c0_12, %c0_13, %c0_14] : memref<1x1x256xf32, #tpu.memory_space<vmem>>, vector<1x1x256xf32>
    %36 = vector.shape_cast %35 : vector<1x1x256xf32> to vector<1x256xf32>
    %37 = arith.addf %36, %27 : vector<1x256xf32>
    %c0_15 = arith.constant 0 : index
    %c0_16 = arith.constant 0 : index
    %c0_17 = arith.constant 0 : index
    %38 = vector.load %arg5[%c0_15, %c0_16, %c0_17] : memref<1x1x256xf32, #tpu.memory_space<vmem>>, vector<1x1x256xf32>
    %39 = vector.shape_cast %38 : vector<1x1x256xf32> to vector<1x256xf32>
    %40 = vector.shape_cast %37 : vector<1x256xf32> to vector<1x1x256xf32>
    tpu.vector_store %arg5[%c0_15, %c0_16, %c0_17], %40 {strides = array<i32>} : memref<1x1x256xf32, #tpu.memory_space<vmem>>, vector<1x1x256xf32>,
    %c0_18 = arith.constant 0 : index
    %c0_19 = arith.constant 0 : index
    %c0_20 = arith.constant 0 : index
    %41 = vector.load %arg6[%c0_18, %c0_19, %c0_20] : memref<1x1x256xf32, #tpu.memory_space<vmem>>, vector<1x1x256xf32>
    %42 = vector.shape_cast %41 : vector<1x1x256xf32> to vector<1x256xf32>
    %43 = arith.addf %42, %34 : vector<1x256xf32>
    %c0_21 = arith.constant 0 : index
    %c0_22 = arith.constant 0 : index
    %c0_23 = arith.constant 0 : index
    %44 = vector.load %arg6[%c0_21, %c0_22, %c0_23] : memref<1x1x256xf32, #tpu.memory_space<vmem>>, vector<1x1x256xf32>
    %45 = vector.shape_cast %44 : vector<1x1x256xf32> to vector<1x256xf32>
    %46 = vector.shape_cast %43 : vector<1x256xf32> to vector<1x1x256xf32>
    tpu.vector_store %arg6[%c0_21, %c0_22, %c0_23], %46 {strides = array<i32>} : memref<1x1x256xf32, #tpu.memory_space<vmem>>, vector<1x1x256xf32>,
    return
  }
  func.func @transform_0(%arg0: i32, %arg1: i32, %arg2: i32) -> (i32, i32, i32) {
    %c1_i32 = arith.constant 1 : i32
    %0 = arith.muli %arg1, %c1_i32 : i32
    %1 = arith.addi %0, %arg2 : i32
    %c0_i32 = arith.constant 0 : i32
    %c0_i32_0 = arith.constant 0 : i32
    return %arg0, %c0_i32, %1 : i32, i32, i32
  }
  func.func @transform_1(%arg0: i32, %arg1: i32, %arg2: i32) -> (i32, i32, i32) {
    %c1_i32 = arith.constant 1 : i32
    %0 = arith.muli %arg1, %c1_i32 : i32
    %1 = arith.addi %0, %arg2 : i32
    %c0_i32 = arith.constant 0 : i32
    %c0_i32_0 = arith.constant 0 : i32
    return %arg0, %c0_i32, %1 : i32, i32, i32
  }
  func.func @transform_2(%arg0: i32, %arg1: i32, %arg2: i32) -> (i32, i32, i32) {
    %c1_i32 = arith.constant 1 : i32
    %0 = arith.muli %arg0, %c1_i32 : i32
    %1 = arith.addi %0, %arg1 : i32
    %c0_i32 = arith.constant 0 : i32
    %c0_i32_0 = arith.constant 0 : i32
    %c0_i32_1 = arith.constant 0 : i32
    return %1, %c0_i32, %c0_i32_0 : i32, i32, i32
  }
  func.func @transform_3(%arg0: i32, %arg1: i32, %arg2: i32) -> (i32, i32, i32) {
    %c1_i32 = arith.constant 1 : i32
    %0 = arith.muli %arg0, %c1_i32 : i32
    %1 = arith.addi %0, %arg1 : i32
    %c0_i32 = arith.constant 0 : i32
    %c0_i32_0 = arith.constant 0 : i32
    %c0_i32_1 = arith.constant 0 : i32
    return %1, %c0_i32, %c0_i32_0 : i32, i32, i32
  }
}

</mosaic_0001>

<bundles_post_ra>
// kernel: tpu_custom_call.1
= control target key start
LH: loop header
LB: loop body
LE: loop exit
PB: predicated region body
PF: predicated region fallthrough
CT: control target
= control target key end

     0   :  { %9 = vsyncpa [#allocation3], 0  ;;  %s1082_s0 = inlined_call_operand.hbm [shape: f32[2,4,256], index: 0, kind: input, shape index: {}]   ;;  %s1083_s1 = inlined_call_operand.hbm [shape: s32[2,1,256], index: 1, kind: input, shape index: {}]   ;;  %s1084_s2 = inlined_call_operand.hbm [shape: f32[2,1,256], index: 2, kind: output, shape index: {0}]   ;;  %s1085_s3 = inlined_call_operand.hbm [shape: f32[2,1,256], index: 3, kind: output, shape index: {1}]  }
   0x1   :  { %11 = vsyncpa [#allocation3 + $0x1], 0 }
   0x2   :  { %12 = vsyncpa [#allocation6], 0 }
   0x3   :  { %14 = vsyncpa [#allocation6 + $0x1], 0 }
   0x4   :  { %15 = vsyncpa [#allocation4], 0 }
   0x5   :  { %17 = vsyncpa [#allocation4 + $0x1], 0 }
   0x6   :  { %18 = vsyncpa [#allocation9], 0 }
   0x7   :  { %20 = vsyncpa [#allocation9 + $0x1], 0  ;;  %s888_s12 = smov 0   ;;  %s890_s13 = smov 0  }
   0x8   :  { %s892_s14 = smov 0   ;;  %s894_s15 = smov 0  }
   0x9   :  { %s896_s16 = smov 0   ;;  %s898_s17 = smov 0  }
   0xa LB: > { %s585_s18 = sadd.s32 4294967295, %s865_s17   ;;  %s586_s19 = sadd.s32 4294967294, %s865_s17   ;;  %s865_s17 = sphi %s898_s17, %s26_s17   ;;  %s861_s16 = sphi %s896_s16, %s1097_s16   ;;  %s857_s15 = sphi %s894_s15, %s1096_s15   ;;  %s853_s14 = sphi %s892_s14, %s1095_s14   ;;  %s849_s13 = sphi %s890_s13, %s1094_s13   ;;  %s845_s12 = sphi %s888_s12, %s1093_s12  }
   0xb   : > { %s45_s20 = sadd.s32 1, %s861_s16  ;;  %s56_s21 = sadd.s32 1, %s853_s14 }
   0xc   : > { %p47_p0 = scmp.ge.s32.totalorder %s45_s20, 2  ;;  %p63_p1 = scmp.ne.s32.totalorder %s853_s14, %s849_s13 }
   0xd   : > { %p64_p2 = scmp.eq.s32.totalorder %s865_s17, 0  ;;  %p69_p3 = scmp.ne.s32.totalorder %s849_s13, %s845_s12 }
   0xe   : > { %s1099_s20 = smov (%p47_p0, %s45_s20), 0  ;;  %p70_p5 = scmp.eq.s32.totalorder %s585_s18, 0 }
   0xf   : > { %p929_p4 = por %p64_p2, %p63_p1  ;;  %s51_s23 = ssub.s32 %s861_s16, %s1099_s20 }
  0x10   : > { %p125_p6 = scmp.eq.s32.totalorder %s585_s18, 1  ;;  %p54_p7 = scmp.eq.s32.totalorder %s51_s23, 0 }
  0x11   : > { %p935_p8 = por %p70_p5, %p69_p3  ;;  %p131_p10 = scmp.eq.s32.totalorder %s586_s19, 1 }
  0x12   : > { %p939_p9 = por %p125_p6, %p63_p1  ;;  %p588_p12 = scmp.ge.s32.totalorder %s865_s17, 2 }
  0x13   : > { %s944_s26 = scalar_select %p54_p7, %s853_s14, %s56_s21  }
  0x14   : > { %p946_p11 = por %p131_p10, %p69_p3  ;;  %p628_p13 = scmp.lt.s32.totalorder %s865_s17, 2 }
  0x15   : > { %s179_s28 = sand.u32 1, %s853_s14   ;;  %s605_s30 = sshll.u32 %s861_s16, 3 }
  0x16   : > { %s589_s29 = sshll.u32 %s179_s28, 3  ;;  %s191_s6 = scalar_lea.hbm %s1082_s0, %s605_s30 }
  0x17   : > { %s183_s7 = scalar_lea.vmem [#allocation2], %s589_s29  ;;  %s193_s9 = sshll.u32 %s191_s6, 4  ;;  %s194_s9 = int_to_ptr.hbm [resolvable:$true] %s193_s9 }
  0x18   : > { %s195_s8 = sshll.u32 %s183_s7, 4  ;;  %p959_p0 = pnand %p628_p13, %p929_p4  ;;  %s196_s8 = int_to_ptr.vmem [resolvable:$true] %s195_s8 }
  0x19   : > { %p594_p1 = scmp.ge.s32.totalorder %s865_s17, 1  ;;  %p222_p2 = scmp.lt.s32.totalorder %s865_s17, 3 }
  0x1a   : > { %s180_s11 = scalar_lea.sflag [#allocation3], %s179_s28  ;;  %s592_s18 = sshll.u32 %s179_s28, 1 }
  0x1b   : > { %617 = dma.hbm_to_vmem [thread:$0]  (!%p959_p0), %s194_s9, 128, %s196_s8, %s180_s11  }
  0x1c   : > { %p223_p3 = pnand %p594_p1, %p222_p2  ;;  %s593_s19 = sshll.u32 %s861_s16, 1 }
  0x1d   : > { %s213_s29 = scalar_lea.hbm %s1083_s1, %s593_s19  ;;  %s206_s30 = scalar_lea.vmem [#allocation5], %s592_s18 }
  0x1e   : > { %s217_s22 = sshll.u32 %s206_s30, 4  ;;  %s215_s4 = sshll.u32 %s213_s29, 4  ;;  %s218_s22 = int_to_ptr.vmem [resolvable:$true] %s217_s22  ;;  %s216_s4 = int_to_ptr.hbm [resolvable:$true] %s215_s4 }
  0x1f   : > { %s203_s5 = scalar_lea.sflag [#allocation6], %s179_s28  ;;  %226 = sbr.rel (%p223_p3) target bundleno = 145 (0x91), region = 28 }
  0x20   : > { %620 = dma.hbm_to_vmem [thread:$0]  (!%p959_p0), %s216_s4, 32, %s218_s22, %s203_s5  }
  0x21   : > { %s974_s6 = sand.u32 (!%p223_p3), 1, %s849_s13  }
  0x22   : > { %s595_s7 = sshll.u32 (!%p223_p3), %s974_s6, 3  ;;  %s229_s8 = scalar_lea.sflag (!%p223_p3), [#allocation3], %s974_s6 }
  0x23   : > { %s232_s9 = scalar_lea.vmem (!%p223_p3), [#allocation2], %s595_s7 }
  0x24   : > { %828 = dma.done.wait (%p935_p8), %s229_s8, 128  }
  0x25   : > { %830 = vsyncadd (%p935_p8), %s229_s8, 4294967168  ;;  %s983_s28 = sshll.u32 %s974_s6, 1  ;;  %s239_s10 = scalar_lea.sflag [#allocation6], %s974_s6 }
  0x26   : > { %s242_s11 = scalar_lea.vmem [#allocation5], %s983_s28 }
  0x27   : > { %832 = dma.done.wait (%p935_p8), %s239_s10, 32  }
  0x28   : > { %834 = vsyncadd (%p935_p8), %s239_s10, 4294967264  ;;  %v292_v0 = vld [vmem:[%s232_s9] sm:$0xff]  ;;  %v286_v3 = vlaneseq  ;;  %s996_s18 = scalar_lea.vmem [#allocation7], %s983_s28  ;;  %v867_v5 = vmov 0.0   ;;  %s1002_s24 = scalar_lea.vmem [#allocation8], %s983_s28  ;;  %vm308_vm1 = vcmask 1043456  }
  0x29   : > { %301 = vst [vmem:[#allocation1] ss:$2 sm:$0xff] %v292_v0  ;;  %v293_v26 = vld [vmem:[%s242_s11] sm:$0x3]  ;;  %s601_s19 = sshll.u32 %s857_s15, 1  ;;  %vm382_vm4 = vcmask 1040384  }
  0x2a   : > { %vm991_vm0 = vcmp.lt.s32.totalorder %v286_v3, 256  ;;  %v295_v27 = vshrl.u32 %v286_v3, 7  ;;  %v297_v28 = vperm.slane %v293_v26, 1  ;;  %v296_v30 = vperm.slane %v293_v26, 0  ;;  %s419_s29 = scalar_lea.hbm %s1084_s2, %s601_s19  ;;  %s421_s30 = sshll.u32 %s996_s18, 4  ;;  %s422_s30 = int_to_ptr.vmem [resolvable:$true] %s421_s30 }
  0x2b   : > { %290 = vst.msk [vmem:[%s996_s18] sm:$0x3] %vm991_vm0, %v867_v5  ;;  %vm376_vm5 = vcmp.ne.s32.totalorder %v293_v26, 255  ;;  %s423_s22 = sshll.u32 %s419_s29, 4  ;;  %s403_s4 = scalar_lea.sflag [#allocation4], %s974_s6  ;;  %s424_s22 = int_to_ptr.hbm [resolvable:$true] %s423_s22 }
  0x2c   : > { %291 = vst.msk [vmem:[%s1002_s24] sm:$0x3] %vm991_vm0, %v867_v5  ;;  %vm299_vm2 = vcmp.eq.s32.totalorder %v295_v27, %v297_v28  ;;  %vm298_vm3 = vcmp.eq.s32.totalorder %v295_v27, %v296_v30  ;;  %s761_s5 = sshra.s32 %s424_s22, 4  ;;  %s767_s28 = scalar_lea.hbm %s1084_s2, 4  ;;  %s762_s5 = int_to_ptr.hbm [resolvable:$true] %s761_s5 }
  0x2d   : > { %s763_s7 = scalar_lea.hbm %s762_s5, 2  ;;  %p768_p7 = scmp.lt.s32.totalorder %s762_s5, %s1084_s2 }
  0x2e   : > { %p764_p4 = scmp.ne.s32.totalorder %s762_s5, %s763_s7  ;;  %p769_p8 = scmp.lt.s32.totalorder %s767_s28, %s763_s7 }
  0x30   : > { %v302_v1 = vld.sshfl [vmem:[#allocation1] sm:$0xff pattern:$0x75316420]  ;;  %v303_v2 = vld.sshfl [vmem:[#allocation1 + $0x8] sm:$0xff pattern:$0x75316420]  ;;  %p765_p5 = pnand %p764_p4, %p939_p9  ;;  %p770_p10 = por %p769_p8, %p768_p7 }
  0x31   : > { %323 = vst [vmem:[#allocation1] ss:$2 sm:$0xff] %v292_v0  ;;  %v307_v31 = vsel %vm299_vm2, %v303_v2, 0.0  ;;  %v306_v32 = vsel %vm298_vm3, %v302_v1, 0.0 }
  0x32   : > { %v316_v35 = vsel %vm308_vm1, %v307_v31, 0.0  ;;  %v309_v40 = vsel %vm308_vm1, %v306_v32, 0.0  ;;  %p766_p6 = pneg %p765_p5 }
  0x33   : > { %v317_v41 = vrot.slane %v316_v35, 4  ;;  %v310_v44 = vrot.slane %v309_v40, 4 }
  0x34   : > { %p771_p13 = pnand %p770_p10, %p766_p6 }
  0x35   : > { %v318_v47 = vadd.f32 %v317_v41, %v316_v35  ;;  %v311_v50 = vadd.f32 %v310_v44, %v309_v40 }
  0x37   : > { %v319_v53 = vrot.slane %v318_v47, 2  ;;  %v312_v56 = vrot.slane %v311_v50, 2 }
  0x38   : > { %v324_v6 = vld.sshfl [vmem:[#allocation1] sm:$0xff pattern:$0x75316420]  ;;  %v325_v7 = vld.sshfl [vmem:[#allocation1 + $0x8] sm:$0xff pattern:$0x75316420] }
  0x39   : > { %v328_v8 = vsel %vm308_vm1, %v324_v6, -inf  ;;  %v335_v9 = vsel %vm308_vm1, %v325_v7, -inf  ;;  %v320_v57 = vadd.f32 %v319_v53, %v318_v47  ;;  %v313_v58 = vadd.f32 %v312_v56, %v311_v50 }
  0x3a   : > { %v329_v10 = vrot.slane %v328_v8, 4  ;;  %v336_v11 = vrot.slane %v335_v9, 4 }
  0x3b   : > { %v321_v60 = vrot.slane %v320_v57, 1  ;;  %v314_v63 = vrot.slane %v313_v58, 1 }
  0x3c   : > { %v330_v12 = vmax.f32 %v328_v8, %v329_v10  ;;  %v337_v13 = vmax.f32 %v335_v9, %v336_v11  ;;  %v392_v9 = vld [vmem:[%s996_s18] sm:$0x3] }
  0x3d   : > { %v322_v1 = vadd.f32 %v321_v60, %v320_v57  ;;  %v315_v5 = vadd.f32 %v314_v63, %v313_v58 }
  0x3e   : > { %v331_v14 = vrot.slane %v330_v12, 2  ;;  %v338_v15 = vrot.slane %v337_v13, 2 }
  0x40   : > { %v332_v16 = vmax.f32 %v330_v12, %v331_v14  ;;  %v339_v17 = vmax.f32 %v337_v13, %v338_v15 }
  0x42   : > { %v333_v18 = vrot.slane %v332_v16, 1  ;;  %v340_v19 = vrot.slane %v339_v17, 1 }
  0x44   : > { %v341_v20 = vmax.f32 %v339_v17, %v340_v19  ;;  %v334_v21 = vmax.f32 %v332_v16, %v333_v18 }
  0x46   : > { %v344_v22 = vrot.slane %v341_v20, 4 }
  0x48   : > { %v345_v23 = vsel %vm308_vm1, %v334_v21, %v344_v22 }
  0x49   : > { %v347_v24 = vsub.f32 %v292_v0, %v345_v23 }
  0x4b   : > { %v348_v25 = vmul.f32 1.442695, %v347_v24 }
  0x4d   : > { %679 = vpow2.f32 %v348_v25 }
  0x53   : > { %v680_v29 = vpop.eup %679 }
  0x54   : > { %351 = vst [vmem:[#allocation1] ss:$2 sm:$0xff] %v680_v29 }
  0x5b   : > { %v352_v33 = vld.sshfl [vmem:[#allocation1] sm:$0xff pattern:$0x75316420]  ;;  %v353_v34 = vld.sshfl [vmem:[#allocation1 + $0x8] sm:$0xff pattern:$0x75316420] }
  0x5c   : > { %v356_v36 = vsel %vm308_vm1, %v352_v33, 0.0  ;;  %v363_v37 = vsel %vm308_vm1, %v353_v34, 0.0 }
  0x5d   : > { %v357_v38 = vrot.slane %v356_v36, 4  ;;  %v364_v39 = vrot.slane %v363_v37, 4 }
  0x5f   : > { %v358_v42 = vadd.f32 %v357_v38, %v356_v36  ;;  %v365_v43 = vadd.f32 %v364_v39, %v363_v37 }
  0x61   : > { %v359_v45 = vrot.slane %v358_v42, 2  ;;  %v366_v46 = vrot.slane %v365_v43, 2 }
  0x63   : > { %v360_v48 = vadd.f32 %v359_v45, %v358_v42  ;;  %v367_v49 = vadd.f32 %v366_v46, %v365_v43 }
  0x65   : > { %v361_v51 = vrot.slane %v360_v48, 1  ;;  %v368_v52 = vrot.slane %v367_v49, 1 }
  0x67   : > { %v362_v54 = vadd.f32 %v361_v51, %v360_v48  ;;  %v369_v55 = vadd.f32 %v368_v52, %v367_v49 }
  0x69   : > { %681 = vlog2.f32 %v362_v54 }
  0x6a   : > { %683 = vlog2.f32 %v369_v55 }
  0x6f   : > { %v682_v59 = vpop.eup %681 }
  0x70   : > { %v684_v61 = vpop.eup %683  ;;  %v371_v62 = vmul.f32 0.6931472, %v682_v59 }
  0x71   : > { %v373_v0 = vmul.f32 0.6931472, %v684_v61 }
  0x72   : > { %v374_v2 = vadd.f32 %v371_v62, %v334_v21 }
  0x73   : > { %v375_v3 = vadd.f32 %v373_v0, %v341_v20 }
  0x74   : > { %v377_v7 = vsub.f32 %v374_v2, %v315_v5 }
  0x75   : > { %v378_v6 = vsub.f32 %v375_v3, %v322_v1 }
  0x77   : > { %v381_v8 = vrot.slane %v378_v6, 7 }
  0x79   : > { %v383_v10 = vsel %vm382_vm4, %v377_v7, %v381_v8 }
  0x7a   : > { %v385_v11 = vsel %vm376_vm5, %v383_v10, 0.0 }
  0x7b   : > { %v386_v12 = vsub.f32 0.0, %v385_v11  ;;  %v393_v13 = vadd.f32 %v392_v9, %v385_v11 }
  0x7d   : > { %v387_v14 = vmul.f32 1.442695, %v386_v12  ;;  %398 = vst.msk [vmem:[%s996_s18] sm:$0x3] %vm991_vm0, %v393_v13 }
  0x7e   : > { %774 = shalt.err (!%p771_p13)
}
  0x7f   : > { %610 = dma.vmem_to_hbm [thread:$0]  (%p939_p9), %s422_s30, 32, %s424_s22, %s403_s4   ;;  %685 = vpow2.f32 %v387_v14  ;;  %v399_v18 = vld [vmem:[%s1002_s24] sm:$0x3] }
  0x80   : > { %s434_s23 = scalar_lea.hbm %s1085_s3, %s601_s19  ;;  %s436_s29 = sshll.u32 %s1002_s24, 4  ;;  %s437_s29 = int_to_ptr.vmem [resolvable:$true] %s436_s29 }
  0x81   : > { %s438_s5 = sshll.u32 %s434_s23, 4  ;;  %s408_s30 = scalar_lea.sflag [#allocation9], %s974_s6  ;;  %s439_s5 = int_to_ptr.hbm [resolvable:$true] %s438_s5 }
  0x82   : > { %s789_s22 = sshra.s32 %s439_s5, 4  ;;  %s795_s7 = scalar_lea.hbm %s1085_s3, 4  ;;  %s790_s22 = int_to_ptr.hbm [resolvable:$true] %s789_s22 }
  0x83   : > { %s791_s15 = scalar_lea.hbm %s790_s22, 2  ;;  %p796_p3 = scmp.lt.s32.totalorder %s790_s22, %s1085_s3 }
  0x84   : > { %p792_p0 = scmp.ne.s32.totalorder %s790_s22, %s791_s15  ;;  %p797_p4 = scmp.lt.s32.totalorder %s795_s7, %s791_s15 }
  0x85   : > { %v686_v15 = vpop.eup %685 }
  0x86   : > { %v389_v16 = vsub.f32 1.0, %v686_v15  ;;  %p793_p1 = pnand %p792_p0, %p939_p9  ;;  %p798_p5 = por %p797_p4, %p796_p3 }
  0x88   : > { %v390_v17 = vmul.f32 %v389_v16, %v389_v16  ;;  %p794_p2 = pneg %p793_p1 }
  0x8a   : > { %v391_v19 = vmul.f32 %v390_v17, %v385_v11  ;;  %p799_p6 = pnand %p798_p5, %p794_p2 }
  0x8c   : > { %v400_v20 = vadd.f32 %v399_v18, %v391_v19 }
  0x8e   : > { %401 = vst.msk [vmem:[%s1002_s24] sm:$0x3] %vm991_vm0, %v400_v20 }
  0x8f   : > { %802 = shalt.err (!%p799_p6)
}
  0x90   : > { %611 = dma.vmem_to_hbm [thread:$0]  (%p939_p9), %s437_s29, 32, %s439_s5, %s408_s30  }
  0x91 PF: > { %s450_s6 = sand.u32 1, %s845_s12   ;;  %p622_p7 = pnand %p588_p12, %p946_p11 }
  0x92   : > { %s451_s24 = scalar_lea.sflag [#allocation4], %s450_s6 }
  0x93   : > { %p623_p8 = pneg %p622_p7 }
  0x95   : > { %836 = dma.done.wait (%p623_p8), %s451_s24, 32  }
  0x96   : > { %838 = vsyncadd (%p623_p8), %s451_s24, 4294967264  ;;  %s461_s28 = scalar_lea.sflag [#allocation9], %s450_s6 }
  0x97   : > { %840 = dma.done.wait (%p623_p8), %s461_s28, 32  }
  0x98   : > { %842 = vsyncadd (%p623_p8), %s461_s28, 4294967264  ;;  %s26_s17 = sadd.s32 1, %s865_s17   ;;  %s1093_s12 = smov %s849_s13 }
  0x99   : > { %p23_p10 = scmp.ge.s32.totalorder %s26_s17, 4   ;;  %s1094_s13 = smov %s853_s14 }
  0x9a   : > { %s1095_s14 = smov %s944_s26  ;;  %s1096_s15 = smov %s861_s16 }
  0x9b   : > { %s1097_s16 = smov %s1099_s20  ;;  %25 = sbr.rel (!%p23_p10) target bundleno = 10 (0xa), region = 107 }
  0xa0   :  { %467 = vsyncpa [#allocation3], 1 }
  0xa1   :  { %469 = vsyncpa [#allocation3 + $0x1], 1 }
  0xa2   :  { %470 = vsyncpa [#allocation6], 1 }
  0xa3   :  { %472 = vsyncpa [#allocation6 + $0x1], 1 }
  0xa4   :  { %473 = vsyncpa [#allocation4], 1 }
  0xa5   :  { %475 = vsyncpa [#allocation4 + $0x1], 1 }
  0xa6   :  { %476 = vsyncpa [#allocation9], 1 }
  0xa7   :  { %478 = vsyncpa [#allocation9 + $0x1], 1 }

</bundles_post_ra>
